<compile_context>
chip_gen: v6e
topology: v6e:2x2x1
jax: 0.10.0
libtpu: 0.0.40
codegen_flags: <defaults>
</compile_context>

<pallas_src>
import functools

import jax
import jax.numpy as jnp
from jax.experimental import pallas as pl
from jax.experimental.pallas import tpu as pltpu


def _conv_bn_tanh_kernel(H, W, OH, OW, stride, eps,
                         x_ref, w_ref, g_ref, b_ref, out_ref):
    N, Cout, OM = out_ref.shape            # OM = OH*OW (lane-dense output)
    Cp = x_ref.shape[1]                    # input channels, padded to mult. of 8
    HW = H * W

    x = x_ref[...].astype(jnp.float32)     # (N, Cp, HW), spatial in lanes

    # ---- hoisted halo masks (4 compares + 4 ANDs total) ---------------------
    flat = jax.lax.broadcasted_iota(jnp.int32, (1, 1, HW), 2)
    if W & (W - 1) == 0:                   # W power of two: shift/and, no relayout
        row = flat >> (W.bit_length() - 1)
        col = flat & (W - 1)
    else:
        row = flat // W
        col = flat - row * W
    row_mask = {-1: row >= 1, 0: None, 1: row <= H - 2}
    col_mask = {-1: col >= 1, 0: None, 1: col <= W - 2}

    def lane_roll(v, s):
        # result[..., i] = v[..., (i + s) % HW]  (XLU lane rotate via pltpu.roll,
        # semantics of jnp.roll => shift = -s).  2-D view reshape is free.
        sh = (-s) % HW
        if sh == 0:
            return v
        v2 = v.reshape(N * Cp, HW)
        return pltpu.roll(v2, shift=sh, axis=1).reshape(N, Cp, HW)

    # ---- im2col: 9 rolled + masked taps, each an aligned 8-sublane block ----
    taps = []
    for kh in range(3):
        for kw in range(3):
            dh, dw = kh - 1, kw - 1
            t = lane_roll(x, dh * W + dw)
            rm, cm = row_mask[dh], col_mask[dw]
            m = rm if cm is None else (cm if rm is None else rm & cm)
            if m is not None:
                t = jnp.where(m, t, 0.0)   # zero halo (padding = 1)
            taps.append(t)
    patches = jnp.concatenate(taps, axis=1)          # (N, 9*Cp, HW), tile-aligned

    if stride > 1:
        # Strided conv = one subsample of the stride-1 tap grid (done once).
        K = patches.shape[1]
        patches = jax.lax.slice(
            patches.reshape(N, K, H, W), (0, 0, 0, 0),
            (N, K, (OH - 1) * stride + 1, (OW - 1) * stride + 1),
            (1, 1, stride, stride)).reshape(N, K, OM)

    w = w_ref[...]                                   # (Cout, 9*Cp), f32
    # TODO(synk): cast w/patches to bfloat16 here for peak MXU rate on v6e/v7x
    # at larger C*HW (keep preferred_element_type=f32); kept f32 so the toy
    # shape holds the 1e-4 reference tolerance.

    # ---- conv matmul + one-pass BN statistics --------------------------------
    # Conv bias omitted: cancels in the mean subtraction of training-mode BN.
    inv_cnt = 1.0 / float(N * OM)
    accs = []
    s1 = 0.0                                         # sum(acc)      -> (Cout, 1)
    s2 = 0.0                                         # sum(acc*acc)  -> (Cout, 1)
    for n in range(N):                               # static unroll, N tiny
        a = jnp.dot(w, patches[n], preferred_element_type=jnp.float32)  # (Cout, OM)
        accs.append(a)
        s1 = s1 + jnp.sum(a, axis=1, keepdims=True)
        s2 = s2 + jnp.sum(a * a, axis=1, keepdims=True)

    mean = s1 * inv_cnt
    var = jnp.maximum(s2 * inv_cnt - mean * mean, 0.0)   # one-pass variance (f32)

    # Fused BN affine: y = acc*scale + shift  (rsqrt -> EUP slot).
    scale = g_ref[...] * jax.lax.rsqrt(var + eps)        # (Cout, 1)
    shift = b_ref[...] - mean * scale
    for n in range(N):
        out_ref[n] = jnp.tanh(accs[n] * scale + shift).astype(out_ref.dtype)


def conv_bn_tanh(x_nchw, w_oihw, bias, gamma, beta, *, stride=1, eps=1e-5):
    # `bias` accepted for nn.Conv2d API parity but unused: a per-channel bias
    # cancels exactly under training-mode BatchNorm (identical output).
    del bias
    N, Cin, H, W = x_nchw.shape
    Cout = w_oihw.shape[0]
    OH = (H + 2 - 3) // stride + 1
    OW = (W + 2 - 3) // stride + 1

    # Free reshape NCHW -> (N, C, H*W); tiny channel zero-pad to a multiple of 8
    # so every im2col tap is one aligned 8-sublane block in the kernel.
    Cp = ((Cin + 7) // 8) * 8
    x_flat = x_nchw.reshape(N, Cin, H * W)
    if Cp != Cin:
        x_flat = jnp.pad(x_flat, ((0, 0), (0, Cp - Cin), (0, 0)))
        w_oihw = jnp.pad(w_oihw, ((0, 0), (0, Cp - Cin), (0, 0), (0, 0)))
    # (Cout, Cp, 3, 3) -> (Cout, 9*Cp), K ordered (kh, kw, cin) to match the
    # in-kernel tap concatenation order.
    w_mat = jnp.transpose(w_oihw, (0, 2, 3, 1)).reshape(Cout, 9 * Cp)

    kernel = functools.partial(_conv_bn_tanh_kernel, H, W, OH, OW, stride, eps)
    out = pl.pallas_call(
        kernel,
        out_shape=jax.ShapeDtypeStruct((N, Cout, OH * OW), x_nchw.dtype),
        in_specs=[pl.BlockSpec(memory_space=pltpu.MemorySpace.VMEM)] * 4,
        out_specs=pl.BlockSpec(memory_space=pltpu.MemorySpace.VMEM),
        # 32 MiB scoped VMEM is safe on v5e/v6e/v7x and covers this whole-problem
        # resident kernel with large headroom; raise further when scaling on
        # v5e/v6e (128 MiB physical).
        compiler_params=pltpu.CompilerParams(vmem_limit_bytes=32 * 1024 * 1024),
        # TODO(synk): for large N*H*W, add a grid over batch / output-row tiles
        # (parallel dimension_semantics for v7x's 2 TensorCores) with two-phase
        # BN (partial sum / sum-of-squares, then finalize), sized to 64 MiB VMEM.
    )(
        x_flat,
        w_mat,
        gamma.reshape(Cout, 1).astype(jnp.float32),
        beta.reshape(Cout, 1).astype(jnp.float32),
    )
    return out.reshape(N, Cout, OH, OW)              # free reshape back to NCHW


def _reference(x, w, b, gamma, beta, *, stride=1, eps=1e-5):
    y = jax.lax.conv_general_dilated(
        x, w, (stride, stride), ((1, 1), (1, 1)),
        dimension_numbers=("NCHW", "OIHW", "NCHW"))
    y = y + b[None, :, None, None]
    mean = jnp.mean(y, axis=(0, 2, 3), keepdims=True)
    var = jnp.mean((y - mean) ** 2, axis=(0, 2, 3), keepdims=True)
    y = (y - mean) / jnp.sqrt(var + eps) * gamma[None, :, None, None] + beta[None, :, None, None]
    return jnp.tanh(y)


if __name__ == "__main__":
    channels_in, channels_out, stride = 4, 8, 1
    N, H, W = 2, 16, 16

    key = jax.random.PRNGKey(0)
    kx, kw, kb, kg, kbe = jax.random.split(key, 5)

    x = jax.random.normal(kx, (N, channels_in, H, W), jnp.float32)
    fan_in = channels_in * 3 * 3
    bound = 1.0 / jnp.sqrt(fan_in)
    w = jax.random.uniform(kw, (channels_out, channels_in, 3, 3), jnp.float32, -bound, bound)
    b = jax.random.uniform(kb, (channels_out,), jnp.float32, -bound, bound)
    gamma = 1.0 + 0.1 * jax.random.normal(kg, (channels_out,), jnp.float32)
    beta = 0.1 * jax.random.normal(kbe, (channels_out,), jnp.float32)

    out = conv_bn_tanh(x, w, b, gamma, beta, stride=stride)
    out = jax.block_until_ready(out)

    ref = _reference(x, w, b, gamma, beta, stride=stride)
    assert out.shape == (N, channels_out, H, W)
    assert jnp.allclose(out, ref, atol=1e-4, rtol=1e-4), float(jnp.max(jnp.abs(out - ref)))

    print("KERNEL_OK")
</pallas_src>

<mosaic_0001>
module attributes {stable_mosaic.version = 11 : i64} {
  func.func @_conv_bn_tanh_kernel(%arg0: memref<2x8x256xf32, #tpu.memory_space<vmem>>, %arg1: memref<8x72xf32, #tpu.memory_space<vmem>>, %arg2: memref<8x1xf32, #tpu.memory_space<vmem>>, %arg3: memref<8x1xf32, #tpu.memory_space<vmem>>, %arg4: memref<2x8x256xf32, #tpu.memory_space<vmem>>) attributes {dimension_semantics = [], scalar_prefetch = 0 : i64, scratch_operands = 0 : i64, tpu.core_type = #tpu.core_type<tc>} {
    %c0 = arith.constant 0 : index
    %c0_0 = arith.constant 0 : index
    %c0_1 = arith.constant 0 : index
    %0 = vector.load %arg0[%c0, %c0_0, %c0_1] : memref<2x8x256xf32, #tpu.memory_space<vmem>>, vector<2x8x256xf32>
    %1 = tpu.iota {dimensions = array<i32: 2>} : vector<1x1x256xi32>
    %c4_i32 = arith.constant 4 : i32
    %2 = vector.broadcast %c4_i32 : i32 to vector<1x1x256xi32>
    %3 = arith.shrsi %1, %2 : vector<1x1x256xi32>
    %c15_i32 = arith.constant 15 : i32
    %4 = vector.broadcast %c15_i32 : i32 to vector<1x1x256xi32>
    %5 = arith.andi %1, %4 : vector<1x1x256xi32>
    %c1_i32 = arith.constant 1 : i32
    %6 = vector.broadcast %c1_i32 : i32 to vector<1x1x256xi32>
    %7 = arith.cmpi sge, %3, %6 : vector<1x1x256xi32>
    %c14_i32 = arith.constant 14 : i32
    %8 = vector.broadcast %c14_i32 : i32 to vector<1x1x256xi32>
    %9 = arith.cmpi sle, %3, %8 : vector<1x1x256xi32>
    %c1_i32_2 = arith.constant 1 : i32
    %10 = vector.broadcast %c1_i32_2 : i32 to vector<1x1x256xi32>
    %11 = arith.cmpi sge, %5, %10 : vector<1x1x256xi32>
    %c14_i32_3 = arith.constant 14 : i32
    %12 = vector.broadcast %c14_i32_3 : i32 to vector<1x1x256xi32>
    %13 = arith.cmpi sle, %5, %12 : vector<1x1x256xi32>
    %14 = vector.shape_cast %0 : vector<2x8x256xf32> to vector<16x256xf32>
    %c17_i32 = arith.constant 17 : i32
    %15 = tpu.dynamic_rotate %14 by %c17_i32 dim 1 : vector<16x256xf32>, i32 -> vector<16x256xf32>
    %16 = vector.shape_cast %15 : vector<16x256xf32> to vector<2x8x256xf32>
    %17 = arith.andi %7, %11 : vector<1x1x256xi1>
    %cst = arith.constant 0.000000e+00 : f32
    %18 = vector.shape_cast %17 : vector<1x1x256xi1> to vector<1x1x256xi1>
    %19 = vector.broadcast %18 : vector<1x1x256xi1> to vector<2x8x256xi1>
    %20 = vector.broadcast %cst : f32 to vector<2x8x256xf32>
    %21 = arith.select %19, %16, %20 : vector<2x8x256xi1>, vector<2x8x256xf32>
    %22 = vector.shape_cast %0 : vector<2x8x256xf32> to vector<16x256xf32>
    %c16_i32 = arith.constant 16 : i32
    %23 = tpu.dynamic_rotate %22 by %c16_i32 dim 1 : vector<16x256xf32>, i32 -> vector<16x256xf32>
    %24 = vector.shape_cast %23 : vector<16x256xf32> to vector<2x8x256xf32>
    %cst_4 = arith.constant 0.000000e+00 : f32
    %25 = vector.shape_cast %7 : vector<1x1x256xi1> to vector<1x1x256xi1>
    %26 = vector.broadcast %25 : vector<1x1x256xi1> to vector<2x8x256xi1>
    %27 = vector.broadcast %cst_4 : f32 to vector<2x8x256xf32>
    %28 = arith.select %26, %24, %27 : vector<2x8x256xi1>, vector<2x8x256xf32>
    %29 = vector.shape_cast %0 : vector<2x8x256xf32> to vector<16x256xf32>
    %c15_i32_5 = arith.constant 15 : i32
    %30 = tpu.dynamic_rotate %29 by %c15_i32_5 dim 1 : vector<16x256xf32>, i32 -> vector<16x256xf32>
    %31 = vector.shape_cast %30 : vector<16x256xf32> to vector<2x8x256xf32>
    %32 = arith.andi %7, %13 : vector<1x1x256xi1>
    %cst_6 = arith.constant 0.000000e+00 : f32
    %33 = vector.shape_cast %32 : vector<1x1x256xi1> to vector<1x1x256xi1>
    %34 = vector.broadcast %33 : vector<1x1x256xi1> to vector<2x8x256xi1>
    %35 = vector.broadcast %cst_6 : f32 to vector<2x8x256xf32>
    %36 = arith.select %34, %31, %35 : vector<2x8x256xi1>, vector<2x8x256xf32>
    %37 = vector.shape_cast %0 : vector<2x8x256xf32> to vector<16x256xf32>
    %c1_i32_7 = arith.constant 1 : i32
    %38 = tpu.dynamic_rotate %37 by %c1_i32_7 dim 1 : vector<16x256xf32>, i32 -> vector<16x256xf32>
    %39 = vector.shape_cast %38 : vector<16x256xf32> to vector<2x8x256xf32>
    %cst_8 = arith.constant 0.000000e+00 : f32
    %40 = vector.shape_cast %11 : vector<1x1x256xi1> to vector<1x1x256xi1>
    %41 = vector.broadcast %40 : vector<1x1x256xi1> to vector<2x8x256xi1>
    %42 = vector.broadcast %cst_8 : f32 to vector<2x8x256xf32>
    %43 = arith.select %41, %39, %42 : vector<2x8x256xi1>, vector<2x8x256xf32>
    %44 = vector.shape_cast %0 : vector<2x8x256xf32> to vector<16x256xf32>
    %c255_i32 = arith.constant 255 : i32
    %45 = tpu.dynamic_rotate %44 by %c255_i32 dim 1 : vector<16x256xf32>, i32 -> vector<16x256xf32>
    %46 = vector.shape_cast %45 : vector<16x256xf32> to vector<2x8x256xf32>
    %cst_9 = arith.constant 0.000000e+00 : f32
    %47 = vector.shape_cast %13 : vector<1x1x256xi1> to vector<1x1x256xi1>
    %48 = vector.broadcast %47 : vector<1x1x256xi1> to vector<2x8x256xi1>
    %49 = vector.broadcast %cst_9 : f32 to vector<2x8x256xf32>
    %50 = arith.select %48, %46, %49 : vector<2x8x256xi1>, vector<2x8x256xf32>
    %51 = vector.shape_cast %0 : vector<2x8x256xf32> to vector<16x256xf32>
    %c241_i32 = arith.constant 241 : i32
    %52 = tpu.dynamic_rotate %51 by %c241_i32 dim 1 : vector<16x256xf32>, i32 -> vector<16x256xf32>
    %53 = vector.shape_cast %52 : vector<16x256xf32> to vector<2x8x256xf32>
    %54 = arith.andi %9, %11 : vector<1x1x256xi1>
    %cst_10 = arith.constant 0.000000e+00 : f32
    %55 = vector.shape_cast %54 : vector<1x1x256xi1> to vector<1x1x256xi1>
    %56 = vector.broadcast %55 : vector<1x1x256xi1> to vector<2x8x256xi1>
    %57 = vector.broadcast %cst_10 : f32 to vector<2x8x256xf32>
    %58 = arith.select %56, %53, %57 : vector<2x8x256xi1>, vector<2x8x256xf32>
    %59 = vector.shape_cast %0 : vector<2x8x256xf32> to vector<16x256xf32>
    %c240_i32 = arith.constant 240 : i32
    %60 = tpu.dynamic_rotate %59 by %c240_i32 dim 1 : vector<16x256xf32>, i32 -> vector<16x256xf32>
    %61 = vector.shape_cast %60 : vector<16x256xf32> to vector<2x8x256xf32>
    %cst_11 = arith.constant 0.000000e+00 : f32
    %62 = vector.shape_cast %9 : vector<1x1x256xi1> to vector<1x1x256xi1>
    %63 = vector.broadcast %62 : vector<1x1x256xi1> to vector<2x8x256xi1>
    %64 = vector.broadcast %cst_11 : f32 to vector<2x8x256xf32>
    %65 = arith.select %63, %61, %64 : vector<2x8x256xi1>, vector<2x8x256xf32>
    %66 = vector.shape_cast %0 : vector<2x8x256xf32> to vector<16x256xf32>
    %c239_i32 = arith.constant 239 : i32
    %67 = tpu.dynamic_rotate %66 by %c239_i32 dim 1 : vector<16x256xf32>, i32 -> vector<16x256xf32>
    %68 = vector.shape_cast %67 : vector<16x256xf32> to vector<2x8x256xf32>
    %69 = arith.andi %9, %13 : vector<1x1x256xi1>
    %cst_12 = arith.constant 0.000000e+00 : f32
    %70 = vector.shape_cast %69 : vector<1x1x256xi1> to vector<1x1x256xi1>
    %71 = vector.broadcast %70 : vector<1x1x256xi1> to vector<2x8x256xi1>
    %72 = vector.broadcast %cst_12 : f32 to vector<2x8x256xf32>
    %73 = arith.select %71, %68, %72 : vector<2x8x256xi1>, vector<2x8x256xf32>
    %74 = tpu.concatenate %21, %28, %36, %43, %0, %50, %58, %65, %73 in 1 : vector<2x8x256xf32>, vector<2x8x256xf32>, vector<2x8x256xf32>, vector<2x8x256xf32>, vector<2x8x256xf32>, vector<2x8x256xf32>, vector<2x8x256xf32>, vector<2x8x256xf32>, vector<2x8x256xf32> -> vector<2x72x256xf32>
    %c0_13 = arith.constant 0 : index
    %c0_14 = arith.constant 0 : index
    %75 = vector.load %arg1[%c0_13, %c0_14] : memref<8x72xf32, #tpu.memory_space<vmem>>, vector<8x72xf32>
    %76 = vector.extract_strided_slice %74 {offsets = [0, 0, 0], sizes = [1, 72, 256], strides = [1, 1, 1]} : vector<2x72x256xf32> to vector<1x72x256xf32>
    %77 = vector.shape_cast %76 : vector<1x72x256xf32> to vector<72x256xf32>
    %cst_15 = arith.constant dense<0.000000e+00> : vector<8x256xf32>
    %78 = tpu.matmul %75, %77, %cst_15 {dimension_numbers = #tpu.dot_dimension_numbers<[1], [0], [0], [1], [0, 0, 1, 1], [], []>} : vector<8x72xf32>, vector<72x256xf32>, vector<8x256xf32> -> vector<8x256xf32>
    %cst_16 = arith.constant dense<0.000000e+00> : vector<8xf32>
    %79 = vector.multi_reduction <add>, %78, %cst_16 [1] : vector<8x256xf32> to vector<8xf32>
    %80 = vector.shape_cast %79 : vector<8xf32> to vector<8x1xf32>
    %cst_17 = arith.constant 0.000000e+00 : f32
    %81 = vector.broadcast %cst_17 : f32 to vector<8x1xf32>
    %82 = arith.addf %81, %80 : vector<8x1xf32>
    %83 = arith.mulf %78, %78 : vector<8x256xf32>
    %cst_18 = arith.constant dense<0.000000e+00> : vector<8xf32>
    %84 = vector.multi_reduction <add>, %83, %cst_18 [1] : vector<8x256xf32> to vector<8xf32>
    %85 = vector.shape_cast %84 : vector<8xf32> to vector<8x1xf32>
    %cst_19 = arith.constant 0.000000e+00 : f32
    %86 = vector.broadcast %cst_19 : f32 to vector<8x1xf32>
    %87 = arith.addf %86, %85 : vector<8x1xf32>
    %88 = vector.extract_strided_slice %74 {offsets = [1, 0, 0], sizes = [1, 72, 256], strides = [1, 1, 1]} : vector<2x72x256xf32> to vector<1x72x256xf32>
    %89 = vector.shape_cast %88 : vector<1x72x256xf32> to vector<72x256xf32>
    %cst_20 = arith.constant dense<0.000000e+00> : vector<8x256xf32>
    %90 = tpu.matmul %75, %89, %cst_20 {dimension_numbers = #tpu.dot_dimension_numbers<[1], [0], [0], [1], [0, 0, 1, 1], [], []>} : vector<8x72xf32>, vector<72x256xf32>, vector<8x256xf32> -> vector<8x256xf32>
    %cst_21 = arith.constant dense<0.000000e+00> : vector<8xf32>
    %91 = vector.multi_reduction <add>, %90, %cst_21 [1] : vector<8x256xf32> to vector<8xf32>
    %92 = vector.shape_cast %91 : vector<8xf32> to vector<8x1xf32>
    %93 = arith.addf %82, %92 : vector<8x1xf32>
    %94 = arith.mulf %90, %90 : vector<8x256xf32>
    %cst_22 = arith.constant dense<0.000000e+00> : vector<8xf32>
    %95 = vector.multi_reduction <add>, %94, %cst_22 [1] : vector<8x256xf32> to vector<8xf32>
    %96 = vector.shape_cast %95 : vector<8xf32> to vector<8x1xf32>
    %97 = arith.addf %87, %96 : vector<8x1xf32>
    %cst_23 = arith.constant 0.001953125 : f32
    %98 = vector.broadcast %cst_23 : f32 to vector<8x1xf32>
    %99 = arith.mulf %93, %98 : vector<8x1xf32>
    %cst_24 = arith.constant 0.001953125 : f32
    %100 = vector.broadcast %cst_24 : f32 to vector<8x1xf32>
    %101 = arith.mulf %97, %100 : vector<8x1xf32>
    %102 = arith.mulf %99, %99 : vector<8x1xf32>
    %103 = arith.subf %101, %102 : vector<8x1xf32>
    %cst_25 = arith.constant 0.000000e+00 : f32
    %104 = vector.broadcast %cst_25 : f32 to vector<8x1xf32>
    %105 = arith.maximumf %103, %104 : vector<8x1xf32>
    %c0_26 = arith.constant 0 : index
    %c0_27 = arith.constant 0 : index
    %106 = vector.load %arg2[%c0_26, %c0_27] : memref<8x1xf32, #tpu.memory_space<vmem>>, vector<8x1xf32>
    %cst_28 = arith.constant 9.99999974E-6 : f32
    %107 = vector.broadcast %cst_28 : f32 to vector<8x1xf32>
    %108 = arith.addf %105, %107 : vector<8x1xf32>
    %109 = math.rsqrt %108 : vector<8x1xf32>
    %110 = arith.mulf %106, %109 : vector<8x1xf32>
    %c0_29 = arith.constant 0 : index
    %c0_30 = arith.constant 0 : index
    %111 = vector.load %arg3[%c0_29, %c0_30] : memref<8x1xf32, #tpu.memory_space<vmem>>, vector<8x1xf32>
    %112 = arith.mulf %99, %110 : vector<8x1xf32>
    %113 = arith.subf %111, %112 : vector<8x1xf32>
    %114 = vector.broadcast %110 : vector<8x1xf32> to vector<8x256xf32>
    %115 = arith.mulf %78, %114 : vector<8x256xf32>
    %116 = vector.broadcast %113 : vector<8x1xf32> to vector<8x256xf32>
    %117 = arith.addf %115, %116 : vector<8x256xf32>
    %118 = math.tanh %117 : vector<8x256xf32>
    %c0_31 = arith.constant 0 : index
    %c0_32 = arith.constant 0 : index
    %c0_33 = arith.constant 0 : index
    %119 = vector.load %arg4[%c0_31, %c0_32, %c0_33] : memref<2x8x256xf32, #tpu.memory_space<vmem>>, vector<1x8x256xf32>
    %120 = vector.shape_cast %119 : vector<1x8x256xf32> to vector<8x256xf32>
    %121 = vector.shape_cast %118 : vector<8x256xf32> to vector<1x8x256xf32>
    tpu.vector_store %arg4[%c0_31, %c0_32, %c0_33], %121 {strides = array<i32>} : memref<2x8x256xf32, #tpu.memory_space<vmem>>, vector<1x8x256xf32>,
    %122 = vector.broadcast %110 : vector<8x1xf32> to vector<8x256xf32>
    %123 = arith.mulf %90, %122 : vector<8x256xf32>
    %124 = vector.broadcast %113 : vector<8x1xf32> to vector<8x256xf32>
    %125 = arith.addf %123, %124 : vector<8x256xf32>
    %126 = math.tanh %125 : vector<8x256xf32>
    %c1 = arith.constant 1 : index
    %c0_34 = arith.constant 0 : index
    %c0_35 = arith.constant 0 : index
    %127 = vector.load %arg4[%c1, %c0_34, %c0_35] : memref<2x8x256xf32, #tpu.memory_space<vmem>>, vector<1x8x256xf32>
    %128 = vector.shape_cast %127 : vector<1x8x256xf32> to vector<8x256xf32>
    %129 = vector.shape_cast %126 : vector<8x256xf32> to vector<1x8x256xf32>
    tpu.vector_store %arg4[%c1, %c0_34, %c0_35], %129 {strides = array<i32>} : memref<2x8x256xf32, #tpu.memory_space<vmem>>, vector<1x8x256xf32>,
    return
  }
}

</mosaic_0001>

<bundles_post_ra>
// kernel: tpu_custom_call.1
= control target key start
LH: loop header
LB: loop body
LE: loop exit
PB: predicated region body
PF: predicated region fallthrough
CT: control target
= control target key end

     0   :  { %9 = vsyncpa [#allocation3], 0  ;;  %s781_s0 = inlined_call_operand.hbm [shape: f32[2,8,256], index: 0, kind: input, shape index: {}]   ;;  %s782_s1 = inlined_call_operand.vmem [shape: f32[8,72], index: 1, kind: input, shape index: {}]   ;;  %s783_s2 = inlined_call_operand.vmem [shape: f32[8,1], index: 2, kind: input, shape index: {}]   ;;  %s784_s3 = inlined_call_operand.vmem [shape: f32[8,1], index: 3, kind: input, shape index: {}]   ;;  %s785_s4 = inlined_call_operand.hbm [shape: f32[2,8,256], index: 4, kind: output, shape index: {}]  }
   0x1   :  { %10 = vsyncpa [#allocation4], 0  ;;  %s553_s15 = smov [#allocation2]  }
   0x2   :  { %s16_s16 = sshll.u32 %s553_s15, 4  ;;  %s17_s16 = int_to_ptr.vmem [resolvable:$true] %s16_s16 }
   0x3   :  { %s517_s17 = scalar_lea.vmem %s17_s16, 512  ;;  %p522_p1 = scmp.lt.s32.totalorder %s17_s16, %s17_s16 }
   0x4   :  { %p518_p0 = scmp.ne.s32.totalorder %s17_s16, %s517_s17  ;;  %p523_p2 = scmp.lt.s32.totalorder %s517_s17, %s517_s17 }
   0x6   :  { %p524_p3 = por %p523_p2, %p522_p1 }
   0x8   :  { %p525_p4 = pnand %p524_p3, %p518_p0 }
   0xa   :  { %528 = shalt.err (!%p525_p4)
}
   0xb   :  { %s554_s18 = smov 256   ;;  %s555_s19 = smov 16  }
   0xc   :  { %22 = dma.hbm_to_vmem [thread:$0]  %s781_s0, 512, %s17_s16, [#allocation3], %s554_s18, %s554_s18, %s555_s19  }
   0xd   :  { %549 = dma.done.wait [#allocation3], 512  }
   0xe   :  { %550 = vsyncadd [#allocation3], 4294966784  ;;  %v597_v0 = vld [vmem:[#allocation2 + $0x8] sm:$0xff]  ;;  %v599_v1 = vld [vmem:[#allocation2] sm:$0xff]  ;;  %s556_s22 = smov 111   ;;  %s557_s0 = smov 112   ;;  %v36_v5 = vlaneseq }
   0xf   :  { %208 = vrot.lane.b32.xlu1 %v597_v0, %s556_s22  ;;  %204 = vrot.lane.b32.xlu0 %v599_v1, %s556_s22  ;;  %v603_v2 = vld [vmem:[#allocation2 + $0x18] sm:$0xff]  ;;  %v605_v3 = vld [vmem:[#allocation2 + $0x10] sm:$0xff]  ;;  %s558_s23 = smov 113   ;;  %s559_s24 = smov 127   ;;  %v562_v4 = vmov 0.0  }
  0x10   :  { %s560_s25 = smov 1   ;;  %s561_s26 = smov 15   ;;  %296 = vmatprep.mubr.f32.mxu0 %v562_v4  ;;  %377 = vmatprep.mubr.f32.mxu1 %v562_v4  ;;  %v641_v6 = vand.u32 127, %v36_v5 }
  0x11   :  { %s563_s27 = smov 17  }
  0x12   :  { %v644_v7 = vadd.s32 128, %v641_v6  ;;  %v39_v10 = vshra.s32 %v641_v6, 4  ;;  %v41_v11 = vand.u32 15, %v641_v6  ;;  %vm212_vm4 = vcmp.lt.s32.totalorder %v641_v6, 111 }
  0x13   :  { %210 = vrot.lane.b32.xlu1 %v603_v2, %s556_s22  ;;  %206 = vrot.lane.b32.xlu0 %v605_v3, %s556_s22  ;;  %vm191_vm7 = vcmp.lt.s32.totalorder %v641_v6, 112  ;;  %vm168_vm10 = vcmp.lt.s32.totalorder %v641_v6, 113  ;;  %vm147_vm13 = vcmp.lt.s32.totalorder %v641_v6, 127  ;;  %vm126_vm14 = vcmp.lt.s32.totalorder %v641_v6, 1 }
  0x14   :  { %v40_v8 = vshra.s32 %v644_v7, 4  ;;  %v42_v9 = vand.u32 15, %v644_v7  ;;  %vm662_vm2 = vcmp.le.s32.totalorder %v39_v10, 14  ;;  %vm666_vm3 = vcmp.le.s32.totalorder %v41_v11, 14 }
  0x15   :  { %vm217_vm6 = vmand %vm662_vm2, %vm666_vm3  ;;  %vm692_vm9 = vcmp.ge.s32.totalorder %v41_v11, 1 }
  0x16   :  { %vm652_vm0 = vcmp.le.s32.totalorder %v40_v8, 14  ;;  %vm656_vm1 = vcmp.le.s32.totalorder %v42_v9, 14  ;;  %vm688_vm8 = vcmp.ge.s32.totalorder %v42_v9, 1  ;;  %vm173_vm12 = vmand %vm662_vm2, %vm692_vm9  ;;  %vm729_vm15 = vcmp.ge.s32.totalorder %v40_v8, 1 }
  0x17   :  { %185 = vrot.lane.b32.xlu1 %v605_v3, %s557_s0  ;;  %183 = vrot.lane.b32.xlu0 %v599_v1, %s557_s0  ;;  %vm218_vm5 = vmand %vm652_vm0, %vm656_vm1 }
  0x18   :  { %vm174_vm11 = vmand %vm652_vm0, %vm688_vm8 }
  0x1b   :  { %189 = vrot.lane.b32.xlu1 %v603_v2, %s557_s0  ;;  %187 = vrot.lane.b32.xlu0 %v597_v0, %s557_s0 }
  0x1f   :  { %162 = vrot.lane.b32.xlu1 %v605_v3, %s558_s23  ;;  %160 = vrot.lane.b32.xlu0 %v599_v1, %s558_s23 }
  0x23   :  { %166 = vrot.lane.b32.xlu1 %v603_v2, %s558_s23  ;;  %164 = vrot.lane.b32.xlu0 %v597_v0, %s558_s23 }
  0x27   :  { %141 = vrot.lane.b32.xlu1 %v605_v3, %s559_s24  ;;  %139 = vrot.lane.b32.xlu0 %v599_v1, %s559_s24 }
  0x2b   :  { %145 = vrot.lane.b32.xlu1 %v603_v2, %s559_s24  ;;  %143 = vrot.lane.b32.xlu0 %v597_v0, %s559_s24 }
  0x2f   :  { %120 = vrot.lane.b32.xlu1 %v605_v3, %s560_s25  ;;  %118 = vrot.lane.b32.xlu0 %v599_v1, %s560_s25 }
  0x33   :  { %124 = vrot.lane.b32.xlu1 %v603_v2, %s560_s25  ;;  %122 = vrot.lane.b32.xlu0 %v597_v0, %s560_s25 }
  0x37   :  { %97 = vrot.lane.b32.xlu1 %v605_v3, %s561_s26  ;;  %95 = vrot.lane.b32.xlu0 %v599_v1, %s561_s26 }
  0x3b   :  { %101 = vrot.lane.b32.xlu1 %v603_v2, %s561_s26  ;;  %99 = vrot.lane.b32.xlu0 %v597_v0, %s561_s26 }
  0x3f   :  { %76 = vrot.lane.b32.xlu1 %v605_v3, %s555_s19  ;;  %74 = vrot.lane.b32.xlu0 %v599_v1, %s555_s19 }
  0x43   :  { %80 = vrot.lane.b32.xlu1 %v603_v2, %s555_s19  ;;  %78 = vrot.lane.b32.xlu0 %v597_v0, %s555_s19 }
  0x47   :  { %53 = vrot.lane.b32.xlu1 %v605_v3, %s563_s27  ;;  %51 = vrot.lane.b32.xlu0 %v599_v1, %s563_s27 }
  0x4b   :  { %57 = vrot.lane.b32.xlu1 %v603_v2, %s563_s27  ;;  %55 = vrot.lane.b32.xlu0 %v597_v0, %s563_s27 }
  0x81   :  { %v209_v16 = vpop.permute.xlu1 %208  ;;  %v205_v17 = vpop.permute.xlu0 %204 }
  0x82   :  { %v215_v18 = vsel %vm212_vm4, %v209_v16, %v205_v17  ;;  %v213_v19 = vsel %vm212_vm4, %v205_v17, %v209_v16 }
  0x83   :  { %450 = vmatprep.subr.msk.mxu0 %vm218_vm5, %v215_v18 }
  0x84   :  { %451 = vmatpush1.msk.msra.mxu0 %vm217_vm6, %v213_v19 }
  0x85   :  { %v211_v20 = vpop.permute.xlu1 %210  ;;  %v207_v21 = vpop.permute.xlu0 %206 }
  0x86   :  { %v216_v22 = vsel %vm212_vm4, %v211_v20, %v207_v21  ;;  %v214_v23 = vsel %vm212_vm4, %v207_v21, %v211_v20  ;;  %vm109_vm4 = vmand %vm729_vm15, %vm656_vm1 }
  0x87   :  { %467 = vmatprep.subr.msk.mxu1 %vm218_vm5, %v216_v22 }
  0x88   :  { %468 = vmatpush1.msk.msra.mxu1 %vm217_vm6, %v214_v23  ;;  %vm82_vm6 = vcmp.lt.s32.totalorder %v641_v6, 16 }
  0x89   :  { %v186_v24 = vpop.permute.xlu1 %185  ;;  %v184_v25 = vpop.permute.xlu0 %183 }
  0x8d   :  { %v190_v26 = vpop.permute.xlu1 %189  ;;  %v188_v27 = vpop.permute.xlu0 %187 }
  0x8e   :  { %v193_v28 = vsel %vm191_vm7, %v186_v24, %v190_v26  ;;  %v195_v29 = vsel %vm191_vm7, %v190_v26, %v186_v24  ;;  %v192_v30 = vsel %vm191_vm7, %v184_v25, %v188_v27  ;;  %v194_v31 = vsel %vm191_vm7, %v188_v27, %v184_v25 }
  0x8f   :  { %452 = vmatprep.subr.msk.mxu0 %vm652_vm0, %v194_v31  ;;  %469 = vmatprep.subr.msk.mxu1 %vm652_vm0, %v195_v29  ;;  %vm735_vm0 = vcmp.ge.s32.totalorder %v39_v10, 1 }
  0x90   :  { %453 = vmatpush1.msk.msra.mxu0 %vm662_vm2, %v192_v30  ;;  %470 = vmatpush1.msk.msra.mxu1 %vm662_vm2, %v193_v28  ;;  %vm103_vm2 = vcmp.lt.s32.totalorder %v641_v6, 15  ;;  %vm108_vm5 = vmand %vm735_vm0, %vm666_vm3 }
  0x91   :  { %v163_v32 = vpop.permute.xlu1 %162  ;;  %v161_v33 = vpop.permute.xlu0 %160  ;;  %vm64_vm7 = vmand %vm735_vm0, %vm692_vm9 }
  0x95   :  { %v167_v36 = vpop.permute.xlu1 %166  ;;  %v165_v37 = vpop.permute.xlu0 %164 }
  0x96   :  { %v170_v38 = vsel %vm168_vm10, %v163_v32, %v167_v36  ;;  %v172_v39 = vsel %vm168_vm10, %v167_v36, %v163_v32  ;;  %v169_v40 = vsel %vm168_vm10, %v161_v33, %v165_v37  ;;  %v171_v41 = vsel %vm168_vm10, %v165_v37, %v161_v33 }
  0x97   :  { %454 = vmatprep.subr.msk.mxu0 %vm174_vm11, %v171_v41  ;;  %471 = vmatprep.subr.msk.mxu1 %vm174_vm11, %v172_v39  ;;  %vm228_vm10 = vcmask 588800   ;;  %v564_v33 = vmov 0  }
  0x98   :  { %455 = vmatpush1.msk.msra.mxu0 %vm173_vm12, %v169_v40  ;;  %472 = vmatpush1.msk.msra.mxu1 %vm173_vm12, %v170_v38 }
  0x99   :  { %v142_v42 = vpop.permute.xlu1 %141  ;;  %v140_v43 = vpop.permute.xlu0 %139  ;;  %497 = vset.pattern.permute.xlu1 %v564_v33  ;;  %498 = vset.pattern.permute.xlu0 %v564_v33 }
  0x9d   :  { %v146_v44 = vpop.permute.xlu1 %145  ;;  %v144_v45 = vpop.permute.xlu0 %143 }
  0x9e   :  { %v149_v46 = vsel %vm147_vm13, %v142_v42, %v146_v44  ;;  %v151_v47 = vsel %vm147_vm13, %v146_v44, %v142_v42  ;;  %v148_v48 = vsel %vm147_vm13, %v140_v43, %v144_v45  ;;  %v150_v49 = vsel %vm147_vm13, %v144_v45, %v140_v43 }
  0x9f   :  { %456 = vmatprep.subr.msk.mxu0 %vm656_vm1, %v150_v49  ;;  %473 = vmatprep.subr.msk.mxu1 %vm656_vm1, %v151_v47  ;;  %vm59_vm1 = vcmp.lt.s32.totalorder %v641_v6, 17  ;;  %v227_v6 = vld [vmem:[%s782_s1] sm:$0xff] }
  0xa0   :  { %457 = vmatpush1.msk.msra.mxu0 %vm666_vm3, %v148_v48  ;;  %474 = vmatpush1.msk.msra.mxu1 %vm666_vm3, %v149_v46  ;;  %vm65_vm3 = vmand %vm729_vm15, %vm688_vm8  ;;  %v399_v46 = vld [vmem:[%s783_s2] sm:$0xff]  ;;  %s565_s2 = smov [#allocation5]  }
  0xa1   :  { %v121_v50 = vpop.permute.xlu1 %120  ;;  %v119_v51 = vpop.permute.xlu0 %118  ;;  %254 = vmatprep.subr.mxu0 %v597_v0  ;;  %335 = vmatprep.subr.mxu1 %v603_v2  ;;  %v403_v49 = vld [vmem:[%s784_s3] sm:$0xff]  ;;  %s438_s3 = sshll.u32 %s565_s2, 4  ;;  %s439_s3 = int_to_ptr.vmem [resolvable:$true] %s438_s3 }
  0xa2   :  { %255 = vmatpush1.msra.mxu0 %v599_v1  ;;  %336 = vmatpush1.msra.mxu1 %v605_v3  ;;  %s529_s7 = scalar_lea.vmem %s439_s3, 512  ;;  %p534_p6 = scmp.lt.s32.totalorder %s439_s3, %s439_s3 }
  0xa3   :  { %p530_p5 = scmp.ne.s32.totalorder %s439_s3, %s529_s7  ;;  %p535_p7 = scmp.lt.s32.totalorder %s529_s7, %s529_s7 }
  0xa5   :  { %v125_v52 = vpop.permute.xlu1 %124  ;;  %v123_v53 = vpop.permute.xlu0 %122  ;;  %p536_p8 = por %p535_p7, %p534_p6 }
  0xa6   :  { %v128_v54 = vsel %vm126_vm14, %v121_v50, %v125_v52  ;;  %v130_v55 = vsel %vm126_vm14, %v125_v52, %v121_v50  ;;  %v127_v56 = vsel %vm126_vm14, %v119_v51, %v123_v53  ;;  %v129_v57 = vsel %vm126_vm14, %v123_v53, %v119_v51 }
  0xa7   :  { %458 = vmatprep.subr.msk.mxu0 %vm688_vm8, %v127_v56  ;;  %475 = vmatprep.subr.msk.mxu1 %vm688_vm8, %v128_v54  ;;  %p537_p9 = pnand %p536_p8, %p530_p5 }
  0xa8   :  { %459 = vmatpush1.msk.msra.mxu0 %vm692_vm9, %v129_v57  ;;  %476 = vmatpush1.msk.msra.mxu1 %vm692_vm9, %v130_v55 }
  0xa9   :  { %v98_v58 = vpop.permute.xlu1 %97  ;;  %v96_v59 = vpop.permute.xlu0 %95 }
  0xad   :  { %v102_v62 = vpop.permute.xlu1 %101  ;;  %v100_v63 = vpop.permute.xlu0 %99 }
  0xae   :  { %v105_v0 = vsel %vm103_vm2, %v98_v58, %v102_v62  ;;  %v107_v1 = vsel %vm103_vm2, %v102_v62, %v98_v58  ;;  %v104_v2 = vsel %vm103_vm2, %v96_v59, %v100_v63  ;;  %v106_v3 = vsel %vm103_vm2, %v100_v63, %v96_v59 }
  0xaf   :  { %460 = vmatprep.subr.msk.mxu0 %vm109_vm4, %v104_v2  ;;  %477 = vmatprep.subr.msk.mxu1 %vm109_vm4, %v105_v0 }
  0xb0   :  { %461 = vmatpush1.msk.msra.mxu0 %vm108_vm5, %v106_v3  ;;  %478 = vmatpush1.msk.msra.mxu1 %vm108_vm5, %v107_v1 }
  0xb1   :  { %v77_v4 = vpop.permute.xlu1 %76  ;;  %v75_v5 = vpop.permute.xlu0 %74 }
  0xb5   :  { %v81_v7 = vpop.permute.xlu1 %80  ;;  %v79_v8 = vpop.permute.xlu0 %78 }
  0xb6   :  { %v84_v9 = vsel %vm82_vm6, %v77_v4, %v81_v7  ;;  %v86_v10 = vsel %vm82_vm6, %v81_v7, %v77_v4  ;;  %v83_v11 = vsel %vm82_vm6, %v75_v5, %v79_v8  ;;  %v85_v12 = vsel %vm82_vm6, %v79_v8, %v75_v5 }
  0xb7   :  { %462 = vmatprep.subr.msk.mxu0 %vm729_vm15, %v83_v11  ;;  %479 = vmatprep.subr.msk.mxu1 %vm729_vm15, %v84_v9 }
  0xb8   :  { %463 = vmatpush1.msk.msra.mxu0 %vm735_vm0, %v85_v12  ;;  %480 = vmatpush1.msk.msra.mxu1 %vm735_vm0, %v86_v10 }
  0xb9   :  { %v54_v13 = vpop.permute.xlu1 %53  ;;  %v52_v14 = vpop.permute.xlu0 %51 }
  0xbd   :  { %v58_v15 = vpop.permute.xlu1 %57  ;;  %v56_v16 = vpop.permute.xlu0 %55 }
  0xbe   :  { %v61_v17 = vsel %vm59_vm1, %v54_v13, %v58_v15  ;;  %v63_v18 = vsel %vm59_vm1, %v58_v15, %v54_v13  ;;  %v60_v19 = vsel %vm59_vm1, %v52_v14, %v56_v16  ;;  %v62_v20 = vsel %vm59_vm1, %v56_v16, %v52_v14 }
  0xbf   :  { %464 = vmatprep.subr.msk.mxu0 %vm65_vm3, %v60_v19  ;;  %481 = vmatprep.subr.msk.mxu1 %vm65_vm3, %v61_v17 }
  0xc0   :  { %465 = vmatpush1.msk.msra.mxu0 %vm64_vm7, %v62_v20  ;;  %482 = vmatpush1.msk.msra.mxu1 %vm64_vm7, %v63_v18 }
  0xc1   :  { %466 = vmatmul.mubr.msk.f32.vlgmr.msra.gmra.mxu0 %vm228_vm10, %v227_v6  ;;  %483 = vmatmul.mubr.msk.f32.vlgmr.msra.gmra.mxu1 %vm228_vm10, %v227_v6 }
 0x181   :  { %v298_v21 = vpop.f32.mrf.mxu0  ;;  %v379_v22 = vpop.f32.mrf.mxu1 }
 0x182   :  { %v307_v28 = vmul.f32 %v298_v21, %v298_v21  ;;  %v388_v31 = vmul.f32 %v379_v22, %v379_v22 }
 0x183   :  { %v300_v23 = vpop.f32.mrf.mxu0  ;;  %v381_v24 = vpop.f32.mrf.mxu1 }
 0x184   :  { %v308_v25 = vmul.f32 %v300_v23, %v300_v23  ;;  %v384_v26 = vadd.f32 %v381_v24, %v379_v22  ;;  %v303_v27 = vadd.f32 %v300_v23, %v298_v21  ;;  %v389_v29 = vmul.f32 %v381_v24, %v381_v24 }
 0x186   :  { %385 = vadd.xlane.f32.xlu1 %v384_v26  ;;  %304 = vadd.xlane.f32.xlu0 %v303_v27  ;;  %v309_v30 = vadd.f32 %v308_v25, %v307_v28  ;;  %v390_v32 = vadd.f32 %v389_v29, %v388_v31 }
 0x18a   :  { %310 = vadd.xlane.f32.xlu0 %v309_v30 }
 0x18e   :  { %391 = vadd.xlane.f32.xlu0 %v390_v32 }
 0x20f   :  { %v386_v34 = vpop.xlane.xlu1 %385  ;;  %v305_v35 = vpop.xlane.xlu0 %304 }
 0x210   :  { %v387_v36 = vadd.f32 %v386_v34, %v305_v35 }
 0x212   :  { %v394_v38 = vmul.f32 0.001953125, %v387_v36 }
 0x213   :  { %v311_v37 = vpop.xlane.xlu0 %310 }
 0x214   :  { %v396_v41 = vmul.f32 %v394_v38, %v394_v38 }
 0x217   :  { %v392_v39 = vpop.xlane.xlu0 %391 }
 0x218   :  { %v393_v40 = vadd.f32 %v392_v39, %v311_v37 }
 0x21a   :  { %v395_v42 = vmul.f32 0.001953125, %v393_v40 }
 0x21c   :  { %v397_v43 = vsub.f32 %v395_v42, %v396_v41 }
 0x21e   :  { %v398_v44 = vmax.f32 %v397_v43, 0.0 }
 0x220   :  { %v400_v45 = vadd.f32 1e-05, %v398_v44 }
 0x222   :  { %499 = vrsqrt.f32 %v400_v45 }
 0x22f   :  { %v500_v47 = vpop.eup %499 }
 0x230   :  { %v402_v48 = vmul.f32 %v500_v47, %v399_v46 }
 0x232   :  { %408 = vperm.xlu1 %497, %v402_v48   ;;  %v404_v50 = vmul.f32 %v402_v48, %v394_v38 }
 0x234   :  { %v405_v51 = vsub.f32 %v403_v49, %v404_v50 }
 0x236   :  { %415 = vperm.xlu0 %498, %v405_v51  }
 0x2ad   :  { %v409_v52 = vpop.permute.xlu1 %408 }
 0x2ae   :  { %v411_v53 = vmul.f32 %v409_v52, %v298_v21  ;;  %v412_v54 = vmul.f32 %v409_v52, %v300_v23  ;;  %v424_v55 = vmul.f32 %v409_v52, %v379_v22  ;;  %v425_v56 = vmul.f32 %v409_v52, %v381_v24 }
 0x2b1   :  { %v416_v57 = vpop.permute.xlu0 %415 }
 0x2b2   :  { %v418_v58 = vadd.f32 %v416_v57, %v411_v53  ;;  %v419_v59 = vadd.f32 %v416_v57, %v412_v54  ;;  %v426_v60 = vadd.f32 %v424_v55, %v416_v57  ;;  %v427_v61 = vadd.f32 %v425_v56, %v416_v57 }
 0x2b4   :  { %501 = vtanh.f32 %v418_v58 }
 0x2b5   :  { %503 = vtanh.f32 %v419_v59 }
 0x2b6   :  { %505 = vtanh.f32 %v426_v60 }
 0x2b7   :  { %507 = vtanh.f32 %v427_v61 }
 0x2c1   :  { %v502_v62 = vpop.eup %501 }
 0x2c2   :  { %v504_v63 = vpop.eup %503  ;;  %422 = vst [vmem:[#allocation5] sm:$0xff] %v502_v62 }
 0x2c3   :  { %v506_v0 = vpop.eup %505  ;;  %423 = vst [vmem:[#allocation5 + $0x8] sm:$0xff] %v504_v63 }
 0x2c4   :  { %v508_v1 = vpop.eup %507  ;;  %431 = vst [vmem:[#allocation5 + $0x10] sm:$0xff] %v506_v0 }
 0x2c5   :  { %432 = vst [vmem:[#allocation5 + $0x18] sm:$0xff] %v508_v1 }
 0x2c6   :  { %540 = shalt.err (!%p537_p9)
}
 0x2c7   :  { %444 = dma.vmem_to_hbm [thread:$0]  %s439_s3, 512, %s785_s4, [#allocation4], %s554_s18, %s554_s18, %s555_s19  }
 0x2c8   :  { %551 = dma.done.wait [#allocation4], 512  }
 0x2c9   :  { %552 = vsyncadd [#allocation4], 4294966784 }
 0x2ca   :  { %448 = vsyncpa [#allocation3], 1 }
 0x2cb   :  { %449 = vsyncpa [#allocation4], 1 }

</bundles_post_ra>
